<compile_context>
chip_gen: v7x
topology: tpu7x:2x2x1
jax: 0.10.0
libtpu: 0.0.40
codegen_flags: <defaults>
</compile_context>

<pallas_src>
import jax
import jax.numpy as jnp
from jax.experimental import pallas as pl
from jax.experimental.pallas import tpu as pltpu

C_IN, C_OUT = 3, 3
STRIDE_H, STRIDE_W = 1, 94
PAD_H, PAD_W = 53, 52
DIL_H, DIL_W = 1, 93        # irrelevant for a 1x1 kernel (dilation*(k-1)=0)


def _mix_sigmoid_kernel(x_ref, w_ref, y_ref):
    # x_ref: (C_IN, TILE)  VMEM -- lane-dense flattened (N, H_out, cols) pixels
    # w_ref: (C_IN, C_OUT) SMEM -- 1x1 conv_transpose weight = channel-mix matrix
    # y_ref: (C_OUT, TILE) VMEM
    x = x_ref[...]                                             # single load, reused
    w = [[w_ref[ic, oc] for oc in range(C_OUT)] for ic in range(C_IN)]
    for oc in range(C_OUT):                                    # 9 scalar*vec FMAs (VPU)
        acc = w[0][oc] * x[0:1, :]
        for ic in range(1, C_IN):
            acc = acc + w[ic][oc] * x[ic:ic + 1, :]
        y_ref[oc:oc + 1, :] = jax.nn.sigmoid(acc).astype(y_ref.dtype)


def conv_transpose_sigmoid(x, w):
    n, c_in, h_in, w_in = x.shape
    assert c_in == C_IN
    dtype = x.dtype
    h_out = (h_in - 1) * STRIDE_H - 2 * PAD_H + 1
    w_out = (w_in - 1) * STRIDE_W - 2 * PAD_W + 1
    assert h_out > 0 and w_out > 0, "input too small for this padding/stride"

    # Input columns that actually land inside the output: ow = STRIDE_W*iw - PAD_W.
    iw_lo = max(0, -(-PAD_W // STRIDE_W))
    iw_hi = min(w_in - 1, (w_out - 1 + PAD_W) // STRIDE_W)
    if iw_lo > iw_hi:
        # No column survives: whole output is sigmoid(0) = 0.5.
        return jnp.full((n, C_OUT, h_out, w_out), 0.5, dtype=dtype)
    n_cols = iw_hi - iw_lo + 1

    # Crop H and W *before* the DMA, then flatten lane-dense: (C_IN, N*H_out*n_cols).
    x_valid = x[:, :, PAD_H:PAD_H + h_out, iw_lo:iw_hi + 1]
    x_flat = jnp.transpose(x_valid, (1, 0, 2, 3)).reshape(C_IN, -1)
    L = x_flat.shape[1]

    LANE = 128
    MAX_TILE = 16384   # f32 (8, 16384) padded tile = 512 KiB; in+out, double-buffered ~2 MiB
    l128 = -(-L // LANE) * LANE
    if l128 >= 2 * LANE:
        # Keep >= 2 grid steps so v7x's two TensorCores both get work.
        tile = max(LANE, min(MAX_TILE, (l128 // 2) // LANE * LANE))
    else:
        tile = l128
    l_padded = -(-L // tile) * tile
    x_flat = jnp.pad(x_flat, ((0, 0), (0, l_padded - L)))

    y_flat = pl.pallas_call(
        _mix_sigmoid_kernel,
        out_shape=jax.ShapeDtypeStruct((C_OUT, l_padded), dtype),
        grid=(l_padded // tile,),
        in_specs=[
            pl.BlockSpec((C_IN, tile), lambda i: (0, i)),
            pl.BlockSpec(memory_space=pltpu.MemorySpace.SMEM),
        ],
        out_specs=pl.BlockSpec((C_OUT, tile), lambda i: (0, i)),
        compiler_params=pltpu.CompilerParams(
            dimension_semantics=("parallel",)),
    )(x_flat, w)

    y_dense = jnp.transpose(
        y_flat[:, :L].reshape(C_OUT, n, h_out, n_cols), (1, 0, 2, 3))

    # Width scatter as ONE interior-padded pad (single pass over the big output):
    # ow = STRIDE_W*iw - PAD_W; every untouched position is sigmoid(0) = 0.5.
    ow_lo = STRIDE_W * iw_lo - PAD_W
    ow_hi = STRIDE_W * iw_hi - PAD_W
    out = jax.lax.pad(
        y_dense, jnp.asarray(0.5, dtype=dtype),
        [(0, 0, 0), (0, 0, 0), (0, 0, 0),
         (ow_lo, w_out - 1 - ow_hi, STRIDE_W - 1)])
    return out


def reference(x, w):
    """Plain-JAX reference of conv_transpose2d(1x1, stride=(1,94), pad=(53,52)) + sigmoid."""
    n, _, h_in, w_in = x.shape
    h_out = h_in - 2 * PAD_H                      # stride_h == 1, k == 1
    w_out = (w_in - 1) * STRIDE_W - 2 * PAD_W + 1
    y = jnp.einsum('nihw,io->nohw', x, w, precision=jax.lax.Precision.HIGHEST)
    out = jnp.zeros((n, C_OUT, h_out, w_out), x.dtype)
    for iw in range(w_in):
        ow = STRIDE_W * iw - PAD_W
        if 0 <= ow < w_out:
            out = out.at[:, :, :, ow].set(y[:, :, PAD_H:PAD_H + h_out, iw])
    return jax.nn.sigmoid(out)


if __name__ == "__main__":
    key = jax.random.PRNGKey(0)
    # Small valid NCHW input: batch=2, 3 channels, H=112 (> 106 needed by padding), W=8.
    x = jax.random.normal(key, (2, C_IN, 112, 8), dtype=jnp.float32)
    # Exact weight values from the module, layout (in_ch, out_ch) after squeezing 1x1.
    w = jnp.array([[-0.7576, -0.8314, -0.7894],
                   [-0.3408, -0.6156, -0.3063],
                   [ 1.2174,  1.1322,  1.2979]], dtype=jnp.float32)

    out = jax.block_until_ready(conv_transpose_sigmoid(x, w))

    ref = reference(x, w)
    assert out.shape == ref.shape, (out.shape, ref.shape)
    assert jnp.allclose(out, ref, atol=1e-5, rtol=1e-5), "mismatch vs reference"
    print("KERNEL_OK")
</pallas_src>

<mosaic_0001>
module attributes {stable_mosaic.version = 11 : i64} {
  func.func @_mix_sigmoid_kernel(%arg0: i32, %arg1: memref<3x128xf32, #tpu.memory_space<vmem>>, %arg2: memref<3x3xf32, #tpu.memory_space<smem>>, %arg3: memref<3x128xf32, #tpu.memory_space<vmem>>) attributes {dimension_semantics = [#tpu.dimension_semantics<parallel>], iteration_bounds = array<i64: 1>, scalar_prefetch = 0 : i64, scratch_operands = 0 : i64, tpu.core_type = #tpu.core_type<tc>, window_params = [{transform_indices = @transform_0, window_bounds = array<i64: 3, 128>}, {transform_indices = @transform_1, window_bounds = array<i64: 3, 3>}, {transform_indices = @transform_2, window_bounds = array<i64: 3, 128>}]} {
    %c0 = arith.constant 0 : index
    %c0_0 = arith.constant 0 : index
    %0 = vector.load %arg1[%c0, %c0_0] : memref<3x128xf32, #tpu.memory_space<vmem>>, vector<3x128xf32>
    %c0_1 = arith.constant 0 : index
    %c0_2 = arith.constant 0 : index
    %1 = memref.load %arg2[%c0_1, %c0_2] : memref<3x3xf32, #tpu.memory_space<smem>>
    %c0_3 = arith.constant 0 : index
    %c1 = arith.constant 1 : index
    %2 = memref.load %arg2[%c0_3, %c1] : memref<3x3xf32, #tpu.memory_space<smem>>
    %c0_4 = arith.constant 0 : index
    %c2 = arith.constant 2 : index
    %3 = memref.load %arg2[%c0_4, %c2] : memref<3x3xf32, #tpu.memory_space<smem>>
    %c1_5 = arith.constant 1 : index
    %c0_6 = arith.constant 0 : index
    %4 = memref.load %arg2[%c1_5, %c0_6] : memref<3x3xf32, #tpu.memory_space<smem>>
    %c1_7 = arith.constant 1 : index
    %c1_8 = arith.constant 1 : index
    %5 = memref.load %arg2[%c1_7, %c1_8] : memref<3x3xf32, #tpu.memory_space<smem>>
    %c1_9 = arith.constant 1 : index
    %c2_10 = arith.constant 2 : index
    %6 = memref.load %arg2[%c1_9, %c2_10] : memref<3x3xf32, #tpu.memory_space<smem>>
    %c2_11 = arith.constant 2 : index
    %c0_12 = arith.constant 0 : index
    %7 = memref.load %arg2[%c2_11, %c0_12] : memref<3x3xf32, #tpu.memory_space<smem>>
    %c2_13 = arith.constant 2 : index
    %c1_14 = arith.constant 1 : index
    %8 = memref.load %arg2[%c2_13, %c1_14] : memref<3x3xf32, #tpu.memory_space<smem>>
    %c2_15 = arith.constant 2 : index
    %c2_16 = arith.constant 2 : index
    %9 = memref.load %arg2[%c2_15, %c2_16] : memref<3x3xf32, #tpu.memory_space<smem>>
    %10 = vector.extract_strided_slice %0 {offsets = [0, 0], sizes = [1, 128], strides = [1, 1]} : vector<3x128xf32> to vector<1x128xf32>
    %11 = vector.broadcast %1 : f32 to vector<1x128xf32>
    %12 = arith.mulf %11, %10 : vector<1x128xf32>
    %13 = vector.extract_strided_slice %0 {offsets = [1, 0], sizes = [1, 128], strides = [1, 1]} : vector<3x128xf32> to vector<1x128xf32>
    %14 = vector.broadcast %4 : f32 to vector<1x128xf32>
    %15 = arith.mulf %14, %13 : vector<1x128xf32>
    %16 = arith.addf %12, %15 : vector<1x128xf32>
    %17 = vector.extract_strided_slice %0 {offsets = [2, 0], sizes = [1, 128], strides = [1, 1]} : vector<3x128xf32> to vector<1x128xf32>
    %18 = vector.broadcast %7 : f32 to vector<1x128xf32>
    %19 = arith.mulf %18, %17 : vector<1x128xf32>
    %20 = arith.addf %16, %19 : vector<1x128xf32>
    %21 = arith.negf %20 : vector<1x128xf32>
    %22 = math.exp %21 : vector<1x128xf32>
    %cst = arith.constant 1.000000e+00 : f32
    %23 = vector.broadcast %cst : f32 to vector<1x128xf32>
    %24 = arith.addf %23, %22 : vector<1x128xf32>
    %25 = arith.divf %23, %24 : vector<1x128xf32>
    %c0_17 = arith.constant 0 : index
    %c0_18 = arith.constant 0 : index
    %26 = vector.load %arg3[%c0_17, %c0_18] : memref<3x128xf32, #tpu.memory_space<vmem>>, vector<1x128xf32>
    tpu.vector_store %arg3[%c0_17, %c0_18], %25 {strides = array<i32>} : memref<3x128xf32, #tpu.memory_space<vmem>>, vector<1x128xf32>,
    %27 = vector.extract_strided_slice %0 {offsets = [0, 0], sizes = [1, 128], strides = [1, 1]} : vector<3x128xf32> to vector<1x128xf32>
    %28 = vector.broadcast %2 : f32 to vector<1x128xf32>
    %29 = arith.mulf %28, %27 : vector<1x128xf32>
    %30 = vector.extract_strided_slice %0 {offsets = [1, 0], sizes = [1, 128], strides = [1, 1]} : vector<3x128xf32> to vector<1x128xf32>
    %31 = vector.broadcast %5 : f32 to vector<1x128xf32>
    %32 = arith.mulf %31, %30 : vector<1x128xf32>
    %33 = arith.addf %29, %32 : vector<1x128xf32>
    %34 = vector.extract_strided_slice %0 {offsets = [2, 0], sizes = [1, 128], strides = [1, 1]} : vector<3x128xf32> to vector<1x128xf32>
    %35 = vector.broadcast %8 : f32 to vector<1x128xf32>
    %36 = arith.mulf %35, %34 : vector<1x128xf32>
    %37 = arith.addf %33, %36 : vector<1x128xf32>
    %38 = arith.negf %37 : vector<1x128xf32>
    %39 = math.exp %38 : vector<1x128xf32>
    %cst_19 = arith.constant 1.000000e+00 : f32
    %40 = vector.broadcast %cst_19 : f32 to vector<1x128xf32>
    %41 = arith.addf %40, %39 : vector<1x128xf32>
    %42 = arith.divf %40, %41 : vector<1x128xf32>
    %c1_20 = arith.constant 1 : index
    %c0_21 = arith.constant 0 : index
    %43 = vector.load %arg3[%c1_20, %c0_21] : memref<3x128xf32, #tpu.memory_space<vmem>>, vector<1x128xf32>
    tpu.vector_store %arg3[%c1_20, %c0_21], %42 {strides = array<i32>} : memref<3x128xf32, #tpu.memory_space<vmem>>, vector<1x128xf32>,
    %44 = vector.extract_strided_slice %0 {offsets = [0, 0], sizes = [1, 128], strides = [1, 1]} : vector<3x128xf32> to vector<1x128xf32>
    %45 = vector.broadcast %3 : f32 to vector<1x128xf32>
    %46 = arith.mulf %45, %44 : vector<1x128xf32>
    %47 = vector.extract_strided_slice %0 {offsets = [1, 0], sizes = [1, 128], strides = [1, 1]} : vector<3x128xf32> to vector<1x128xf32>
    %48 = vector.broadcast %6 : f32 to vector<1x128xf32>
    %49 = arith.mulf %48, %47 : vector<1x128xf32>
    %50 = arith.addf %46, %49 : vector<1x128xf32>
    %51 = vector.extract_strided_slice %0 {offsets = [2, 0], sizes = [1, 128], strides = [1, 1]} : vector<3x128xf32> to vector<1x128xf32>
    %52 = vector.broadcast %9 : f32 to vector<1x128xf32>
    %53 = arith.mulf %52, %51 : vector<1x128xf32>
    %54 = arith.addf %50, %53 : vector<1x128xf32>
    %55 = arith.negf %54 : vector<1x128xf32>
    %56 = math.exp %55 : vector<1x128xf32>
    %cst_22 = arith.constant 1.000000e+00 : f32
    %57 = vector.broadcast %cst_22 : f32 to vector<1x128xf32>
    %58 = arith.addf %57, %56 : vector<1x128xf32>
    %59 = arith.divf %57, %58 : vector<1x128xf32>
    %c2_23 = arith.constant 2 : index
    %c0_24 = arith.constant 0 : index
    %60 = vector.load %arg3[%c2_23, %c0_24] : memref<3x128xf32, #tpu.memory_space<vmem>>, vector<1x128xf32>
    tpu.vector_store %arg3[%c2_23, %c0_24], %59 {strides = array<i32>} : memref<3x128xf32, #tpu.memory_space<vmem>>, vector<1x128xf32>,
    return
  }
  func.func @transform_0(%arg0: i32) -> (i32, i32) {
    %c0_i32 = arith.constant 0 : i32
    %c0_i32_0 = arith.constant 0 : i32
    return %c0_i32, %arg0 : i32, i32
  }
  func.func @transform_1(%arg0: i32) -> (i32, i32) {
    %c0_i32 = arith.constant 0 : i32
    %c0_i32_0 = arith.constant 0 : i32
    %c0_i32_1 = arith.constant 0 : i32
    return %c0_i32, %c0_i32_0 : i32, i32
  }
  func.func @transform_2(%arg0: i32) -> (i32, i32) {
    %c0_i32 = arith.constant 0 : i32
    %c0_i32_0 = arith.constant 0 : i32
    return %c0_i32, %arg0 : i32, i32
  }
}

</mosaic_0001>

<bundles_post_ra>
// kernel: tpu_custom_call.1
= control target key start
LH: loop header
LB: loop body
LE: loop exit
PB: predicated region body
PF: predicated region fallthrough
CT: control target
= control target key end

     0   :  { %7 = vsyncpa [#allocation3], 0  ;;  %s264_s0 = inlined_call_operand.hbm [shape: f32[3,128], index: 0, kind: input, shape index: {}]   ;;  %s265_s1 = inlined_call_operand.hbm [shape: f32[3,3], index: 1, kind: input, shape index: {}]   ;;  %s266_s2 = inlined_call_operand.hbm [shape: f32[3,128], index: 2, kind: output, shape index: {}]  }
   0x1   :  { %8 = vsyncpa [#allocation5], 0 }
   0x2   :  { %9 = vsyncpa [#allocation4], 0  ;;  %s210_s9 = smov [#allocation2]   ;;  %s150_s13 = scalar_lea.hbm %s264_s0, 64 }
   0x3   :  { %s16_s10 = sshll.u32 %s210_s9, 4  ;;  %p151_p0 = scmp.ne.s32.totalorder %s264_s0, %s150_s13  ;;  %s17_s10 = int_to_ptr.vmem [resolvable:$true] %s16_s10 }
   0x4   :  { %p154_p1 = scmp.lt.u32.totalorder %s150_s13, %s264_s0 }
   0x6   :  { %p156_p2 = pnand %p154_p1, %p151_p0 }
   0x8   :  { %159 = shalt.err (!%p156_p2)
}
   0x9   :  { %s160_s18 = scalar_lea.vmem %s17_s10, 64  ;;  %p165_p4 = scmp.lt.s32.totalorder %s17_s10, %s17_s10 }
   0xa   :  { %p161_p3 = scmp.ne.s32.totalorder %s17_s10, %s160_s18  ;;  %p166_p5 = scmp.lt.s32.totalorder %s160_s18, %s160_s18 }
   0xc   :  { %p167_p6 = por %p166_p5, %p165_p4 }
   0xe   :  { %p168_p7 = pnand %p167_p6, %p161_p3 }
  0x10   :  { %171 = shalt.err (!%p168_p7)
}
  0x11   :  { %19 = dma.hbm_to_vmem [thread:$0]  %s264_s0, 64, %s17_s10, [#allocation3]  }
  0x12   :  { %s172_s23 = scalar_lea.hbm %s265_s1, 64 }
  0x13   :  { %p173_p8 = scmp.ne.s32.totalorder %s265_s1, %s172_s23  ;;  %p176_p9 = scmp.lt.u32.totalorder %s172_s23, %s265_s1 }
  0x15   :  { %p178_p10 = pnand %p176_p9, %p173_p8 }
  0x17   :  { %181 = shalt.err (!%p178_p10)
}
  0x18   :  { %s211_s28 = smov [#allocation6]  }
  0x19   :  { %27 = dma.hbm_to_smem %s265_s1, 64, %s211_s28, [#allocation5]  }
  0x1a   :  { %204 = dma.done.wait [#allocation3], 64  }
  0x1b   :  { %205 = vsyncadd [#allocation3], 4294967232 }
  0x1c   :  { %206 = dma.done.wait [#allocation5], 64  }
  0x1d   :  { %207 = vsyncadd [#allocation5], 4294967232 }
  0x1e   :  { %34 = sfence }
  0x1f   :  { %s36_s0 = sld [smem:[#allocation6]]  ;;  %s124_s5 = sld [smem:[#allocation6 + $0x1]]  ;;  %v35_v0 = vld [vmem:[#allocation2] sm:$0x7] }
  0x20   :  { %s126_s3 = sld [smem:[#allocation6 + $0x80]]  ;;  %s127_s6 = sld [smem:[#allocation6 + $0x81]] }
  0x21   :  { %s129_s4 = sld [smem:[#allocation6 + $0x100]]  ;;  %s130_s7 = sld [smem:[#allocation6 + $0x101]] }
  0x22   :  { %s125_s8 = sld [smem:[#allocation6 + $0x2]]  ;;  %s212_s1 = smov [#allocation7]  }
  0x23   :  { %s128_s9 = sld [smem:[#allocation6 + $0x82]]  ;;  %s114_s11 = sshll.u32 %s212_s1, 4  ;;  %s115_s11 = int_to_ptr.vmem [resolvable:$true] %s114_s11 }
  0x24   :  { %s131_s10 = sld [smem:[#allocation6 + $0x102]]  ;;  %s182_s12 = scalar_lea.vmem %s115_s11, 64 }
  0x25   :  { %v45_v1 = vstv %s36_s0  ;;  %v66_v6 = vstv %s124_s5  ;;  %p183_p11 = scmp.ne.s32.totalorder %s115_s11, %s182_s12  ;;  %p187_p12 = scmp.lt.s32.totalorder %s115_s11, %s115_s11 }
  0x26   :  { %v47_v2 = vstv %s126_s3  ;;  %v46_v3 = vmul.f32 %v45_v1, %v35_v0  ;;  %v67_v8 = vmul.f32 %v66_v6, %v35_v0  ;;  %v68_v9 = vstv %s127_s6  ;;  %p188_p13 = scmp.lt.s32.totalorder %s182_s12, %s182_s12 }
  0x27   :  { %v48_v4 = vmul.f32 %v47_v2, %v35_v0  ;;  %v53_v5 = vstv %s129_s4  ;;  %v74_v10 = vstv %s130_s7  ;;  %v69_v12 = vmul.f32 %v68_v9, %v35_v0 }
  0x28   :  { %v54_v7 = vmul.f32 %v53_v5, %v35_v0  ;;  %v75_v13 = vmul.f32 %v74_v10, %v35_v0  ;;  %v87_v14 = vstv %s125_s8  ;;  %p189_p0 = por %p188_p13, %p187_p12 }
  0x29   :  { %v50_v11 = vrot.slane %v48_v4, 1  ;;  %v88_v16 = vmul.f32 %v87_v14, %v35_v0  ;;  %v89_v17 = vstv %s128_s9  ;;  %v71_v20 = vrot.slane %v69_v12, 1 }
  0x2a   :  { %v56_v15 = vrot.slane %v54_v7, 2  ;;  %v95_v18 = vstv %s131_s10  ;;  %v77_v21 = vrot.slane %v75_v13, 2  ;;  %v90_v22 = vmul.f32 %v89_v17, %v35_v0  ;;  %p190_p1 = pnand %p189_p0, %p183_p11 }
  0x2b   :  { %v52_v19 = vadd.f32 %v50_v11, %v46_v3  ;;  %v96_v23 = vmul.f32 %v95_v18, %v35_v0  ;;  %v73_v25 = vadd.f32 %v71_v20, %v67_v8 }
  0x2c   :  { %v92_v26 = vrot.slane %v90_v22, 1 }
  0x2d   :  { %v58_v24 = vadd.f32 %v56_v15, %v52_v19  ;;  %v98_v27 = vrot.slane %v96_v23, 2  ;;  %v79_v29 = vadd.f32 %v77_v21, %v73_v25 }
  0x2e   :  { %v94_v30 = vadd.f32 %v92_v26, %v88_v16 }
  0x2f   :  { %v132_v28 = vmul.f32 -1.442695, %v58_v24  ;;  %v133_v31 = vmul.f32 -1.442695, %v79_v29 }
  0x30   :  { %v100_v32 = vadd.f32 %v98_v27, %v94_v30 }
  0x31   :  { %138 = vpow2.f32 %v132_v28 }
  0x32   :  { %140 = vpow2.f32 %v133_v31  ;;  %v134_v33 = vmul.f32 -1.442695, %v100_v32 }
  0x34   :  { %142 = vpow2.f32 %v134_v33 }
  0x3b   :  { %v139_v34 = vpop.eup %138 }
  0x3c   :  { %v62_v35 = vadd.f32 1.0, %v139_v34  ;;  %v141_v36 = vpop.eup %140 }
  0x3d   :  { %v83_v37 = vadd.f32 1.0, %v141_v36 }
  0x3e   :  { %144 = vrcp.f32 %v62_v35  ;;  %v143_v38 = vpop.eup %142 }
  0x3f   :  { %146 = vrcp.f32 %v83_v37  ;;  %v104_v39 = vadd.f32 1.0, %v143_v38 }
  0x41   :  { %148 = vrcp.f32 %v104_v39 }
  0x48   :  { %v145_v40 = vpop.eup %144 }
  0x49   :  { %65 = vst [vmem:[#allocation7] sm:$0x1] %v145_v40  ;;  %v147_v41 = vpop.eup %146 }
  0x4a   :  { %86 = vst [vmem:[#allocation7 + $0x1] sm:$0x1] %v147_v41 }
  0x4b   :  { %v149_v42 = vpop.eup %148 }
  0x4c   :  { %107 = vst [vmem:[#allocation7 + $0x2] sm:$0x1] %v149_v42 }
  0x4d   :  { %193 = shalt.err (!%p190_p1)
}
  0x4e   :  { %s194_s15 = scalar_lea.hbm %s266_s2, 64 }
  0x4f   :  { %p195_p2 = scmp.ne.s32.totalorder %s266_s2, %s194_s15  ;;  %p198_p3 = scmp.lt.u32.totalorder %s194_s15, %s266_s2 }
  0x51   :  { %p200_p4 = pnand %p198_p3, %p195_p2 }
  0x53   :  { %203 = shalt.err (!%p200_p4)
}
  0x54   :  { %117 = dma.vmem_to_hbm [thread:$0]  %s115_s11, 64, %s266_s2, [#allocation4]  }
  0x55   :  { %208 = dma.done.wait [#allocation4], 64  }
  0x56   :  { %209 = vsyncadd [#allocation4], 4294967232 }
  0x57   :  { %121 = vsyncpa [#allocation3], 1 }
  0x58   :  { %122 = vsyncpa [#allocation4], 1 }
  0x59   :  { %123 = vsyncpa [#allocation5], 1 }

</bundles_post_ra>
